<compile_context>
chip_gen: v5e
topology: v5e:2x2
jax: 0.10.0
libtpu: 0.0.40
codegen_flags: <defaults>
</compile_context>

<pallas_src>
import math
import functools

import jax
import jax.numpy as jnp
from jax.experimental import pallas as pl
from jax.experimental.pallas import tpu as pltpu

_LANE = 128


def _self_attn_kernel(x_ref, w_ref, o_ref, *, norm):
    # x_ref: (BT, S, Ep) compute dtype; w_ref: (Ep, 3*Ep) (in, out) layout.
    bt, s, ep = x_ref.shape
    cdtype = x_ref.dtype

    # Fold batch into the matmul M dim (free relayout: S is a multiple of 8).
    x2 = x_ref[...].reshape(bt * s, ep)

    # Fused Q/K/V projection: one MXU matmul, canonical (M,K)x(K,N) layout,
    # f32 accumulation.
    qkv = jnp.dot(x2, w_ref[...], preferred_element_type=jnp.float32)

    q = qkv[:, 0 * ep:1 * ep]
    k = qkv[:, 1 * ep:2 * ep]
    v = qkv[:, 2 * ep:3 * ep]

    # Apply 1/sqrt(d_model) where it is cheapest (static shape-based choice):
    # on q when S >= Ep (O(S*Ep) multiplies), else on the (S, S) scores.
    scale_on_q = s >= ep
    if scale_on_q:
        q = q * norm

    qd = q.astype(cdtype).reshape(bt, s, ep)
    kd = k.astype(cdtype).reshape(bt, s, ep)
    vd = v.astype(cdtype).reshape(bt, s, ep)

    # Attention scores (BT, S, S): last-dim contraction, no transpose
    # materialized; MXU with f32 accumulation.
    scores = jnp.einsum("bqe,bke->bqk", qd, kd,
                        preferred_element_type=jnp.float32)
    if not scale_on_q:
        scores = scores * norm

    # Numerically-stable softmax over the last axis (f32 math); denominator
    # via the EUP reciprocal (separate VLIW slot, ~free).
    scores = scores - jnp.max(scores, axis=-1, keepdims=True)
    p = jnp.exp(scores)
    p = p * pl.reciprocal(jnp.sum(p, axis=-1, keepdims=True), approx=True)

    out = jnp.einsum("bqk,bke->bqe", p.astype(cdtype), vd,
                     preferred_element_type=jnp.float32)
    o_ref[...] = out.astype(o_ref.dtype)


def self_attention(x, wq, wk, wv, *, block_b=None, compute_dtype=jnp.bfloat16):
    """x: (B, S, E); wq/wk/wv: (E, E) PyTorch-layout (out, in), no bias."""
    B, S, E = x.shape
    out_dtype = x.dtype
    norm = 1.0 / math.sqrt(E)  # scale uses the *original* embedding size

    # Pad embedding dim to a multiple of 128 lanes (zero padding is exact:
    # padded q/k/v/output columns are identically zero and sliced away).
    Ep = ((E + _LANE - 1) // _LANE) * _LANE
    pe = Ep - E

    def _prep_w(w):
        wt = w.T.astype(compute_dtype)        # one-time XLA transpose -> (in, out)
        if pe:
            wt = jnp.pad(wt, ((0, pe), (0, pe)))
        return wt

    # Fused weight: (Ep, 3*Ep); column blocks [0:Ep), [Ep:2Ep), [2Ep:3Ep) are
    # the Q, K, V projections respectively.
    w_fused = jnp.concatenate([_prep_w(wq), _prep_w(wk), _prep_w(wv)], axis=1)

    xc = x.astype(compute_dtype)
    if pe:
        xc = jnp.pad(xc, ((0, 0), (0, 0), (0, pe)))

    if block_b is None:
        # >=2 grid steps whenever possible so the "parallel" batch axis is
        # sharded over both TensorCores on v7x (per-step overhead ~0.35us).
        block_b = B if B == 1 else max(
            d for d in range(1, B // 2 + 1) if B % d == 0)
    assert B % block_b == 0, "block_b must divide batch"

    kernel = functools.partial(_self_attn_kernel, norm=norm)

    # The weight block never changes across the grid -> single-buffer it.
    w_spec_kwargs = (
        {"pipeline_mode": pl.Buffered(1)} if hasattr(pl, "Buffered") else {})

    # VMEM budget: double-buffered x/out blocks + single weight buffer + f32
    # intermediates, with headroom, clamped to v7x's 64 MiB physical VMEM.
    cb = jnp.dtype(compute_dtype).itemsize
    ob = jnp.dtype(out_dtype).itemsize
    x_blk = block_b * S * Ep * cb
    o_blk = block_b * S * Ep * ob
    w_blk = Ep * 3 * Ep * cb
    inter = (block_b * S * 3 * Ep * 4              # fused qkv (f32)
             + 3 * block_b * S * Ep * (4 + cb)     # q/k/v f32 + compute copies
             + 2 * block_b * S * S * 4             # scores + p (f32)
             + block_b * S * Ep * 4)               # output accumulator (f32)
    vmem_limit = int(min(max(4 * (2 * x_blk + 2 * o_blk + w_blk + inter),
                             32 << 20),
                         64 << 20))

    out = pl.pallas_call(
        kernel,
        out_shape=jax.ShapeDtypeStruct((B, S, Ep), out_dtype),
        grid_spec=pltpu.PrefetchScalarGridSpec(
            num_scalar_prefetch=0,
            grid=(B // block_b,),
            in_specs=[
                pl.BlockSpec((block_b, S, Ep), lambda b: (b, 0, 0)),      # x
                pl.BlockSpec((Ep, 3 * Ep), lambda b: (0, 0),              # W_qkv
                             **w_spec_kwargs),
            ],
            out_specs=pl.BlockSpec((block_b, S, Ep), lambda b: (b, 0, 0)),
        ),
        compiler_params=pltpu.CompilerParams(
            dimension_semantics=("parallel",),
            vmem_limit_bytes=vmem_limit),
    )(xc, w_fused)

    return out[..., :E] if pe else out


def _reference(x, wq, wk, wv):
    """Pure-JAX f32 reference mirroring the PyTorch forward exactly."""
    E = x.shape[-1]
    q = jnp.einsum("bse,oe->bso", x, wq)
    k = jnp.einsum("bse,oe->bso", x, wk)
    v = jnp.einsum("bse,oe->bso", x, wv)
    att = jnp.einsum("bqe,bke->bqk", q, k) / math.sqrt(E)
    att = jax.nn.softmax(att, axis=-1)
    return jnp.einsum("bqk,bke->bqe", att, v)


if __name__ == "__main__":
    B, S, E = 2, 8, 32  # batch, seq_len, embedding_size

    key = jax.random.PRNGKey(0)
    kx, kq, kk, kv = jax.random.split(key, 4)

    x = jax.random.normal(kx, (B, S, E), dtype=jnp.float32)
    # Deterministic init mimicking nn.Linear's kaiming-uniform bound 1/sqrt(E).
    bound = 1.0 / math.sqrt(E)
    wq = jax.random.uniform(kq, (E, E), jnp.float32, -bound, bound)
    wk = jax.random.uniform(kk, (E, E), jnp.float32, -bound, bound)
    wv = jax.random.uniform(kv, (E, E), jnp.float32, -bound, bound)

    out = jax.block_until_ready(self_attention(x, wq, wk, wv))

    ref = _reference(x, wq, wk, wv)
    assert out.shape == (B, S, E)
    # bf16 MXU feed + approx reciprocal -> bf16-level tolerance vs f32 ref.
    assert jnp.allclose(out, ref, atol=2e-2, rtol=2e-2), "mismatch vs reference"

    print("KERNEL_OK")
</pallas_src>

<mosaic_0001>
module attributes {stable_mosaic.version = 11 : i64} {
  func.func @_self_attn_kernel(%arg0: i32, %arg1: memref<1x8x128xbf16, #tpu.memory_space<vmem>>, %arg2: memref<128x384xbf16, #tpu.memory_space<vmem>>, %arg3: memref<1x8x128xf32, #tpu.memory_space<vmem>>) attributes {dimension_semantics = [#tpu.dimension_semantics<parallel>], iteration_bounds = array<i64: 2>, scalar_prefetch = 0 : i64, scratch_operands = 0 : i64, tpu.core_type = #tpu.core_type<tc>, window_params = [{transform_indices = @transform_0, window_bounds = array<i64: 1, 8, 128>}, {pipeline_mode = #tpu.pipeline_mode<synchronous>, transform_indices = @transform_1, window_bounds = array<i64: 128, 384>}, {transform_indices = @transform_2, window_bounds = array<i64: 1, 8, 128>}]} {
    %c0 = arith.constant 0 : index
    %c0_0 = arith.constant 0 : index
    %c0_1 = arith.constant 0 : index
    %0 = vector.load %arg1[%c0, %c0_0, %c0_1] : memref<1x8x128xbf16, #tpu.memory_space<vmem>>, vector<1x8x128xbf16>
    %1 = vector.shape_cast %0 : vector<1x8x128xbf16> to vector<8x128xbf16>
    %c0_2 = arith.constant 0 : index
    %c0_3 = arith.constant 0 : index
    %2 = vector.load %arg2[%c0_2, %c0_3] : memref<128x384xbf16, #tpu.memory_space<vmem>>, vector<128x384xbf16>
    %cst = arith.constant dense<0.000000e+00> : vector<8x384xf32>
    %3 = tpu.matmul %1, %2, %cst {dimension_numbers = #tpu.dot_dimension_numbers<[1], [0], [0], [1], [0, 0, 1, 1], [], []>} : vector<8x128xbf16>, vector<128x384xbf16>, vector<8x384xf32> -> vector<8x384xf32>
    %4 = vector.extract_strided_slice %3 {offsets = [0, 0], sizes = [8, 128], strides = [1, 1]} : vector<8x384xf32> to vector<8x128xf32>
    %5 = vector.extract_strided_slice %3 {offsets = [0, 128], sizes = [8, 128], strides = [1, 1]} : vector<8x384xf32> to vector<8x128xf32>
    %6 = vector.extract_strided_slice %3 {offsets = [0, 256], sizes = [8, 128], strides = [1, 1]} : vector<8x384xf32> to vector<8x128xf32>
    %7 = arith.truncf %4 : vector<8x128xf32> to vector<8x128xbf16>
    %8 = vector.shape_cast %7 : vector<8x128xbf16> to vector<1x8x128xbf16>
    %9 = arith.truncf %5 : vector<8x128xf32> to vector<8x128xbf16>
    %10 = vector.shape_cast %9 : vector<8x128xbf16> to vector<1x8x128xbf16>
    %11 = arith.truncf %6 : vector<8x128xf32> to vector<8x128xbf16>
    %12 = vector.shape_cast %11 : vector<8x128xbf16> to vector<1x8x128xbf16>
    "tpu.trace_start"() <{level = 10 : i32, message = "bqe,bke->bqk"}> : () -> ()
    %cst_4 = arith.constant dense<0.000000e+00> : vector<1x8x8xf32>
    %13 = tpu.matmul %8, %10, %cst_4 {dimension_numbers = #tpu.dot_dimension_numbers<[2], [2], [1], [1], [0, 0, 0, 1, 1, 1], [0], [0]>} : vector<1x8x128xbf16>, vector<1x8x128xbf16>, vector<1x8x8xf32> -> vector<1x8x8xf32>
    "tpu.trace_stop"() : () -> ()
    %cst_5 = arith.constant 0.176776692 : f32
    %14 = vector.broadcast %cst_5 : f32 to vector<1x8x8xf32>
    %15 = arith.mulf %13, %14 : vector<1x8x8xf32>
    %cst_6 = arith.constant dense<0xFF800000> : vector<1x8xf32>
    %16 = vector.multi_reduction <maximumf>, %15, %cst_6 [2] : vector<1x8x8xf32> to vector<1x8xf32>
    %17 = vector.shape_cast %16 : vector<1x8xf32> to vector<1x8x1xf32>
    %18 = vector.broadcast %17 : vector<1x8x1xf32> to vector<1x8x8xf32>
    %19 = arith.subf %15, %18 : vector<1x8x8xf32>
    %20 = math.exp %19 : vector<1x8x8xf32>
    %cst_7 = arith.constant dense<0.000000e+00> : vector<1x8xf32>
    %21 = vector.multi_reduction <add>, %20, %cst_7 [2] : vector<1x8x8xf32> to vector<1x8xf32>
    %22 = vector.shape_cast %21 : vector<1x8xf32> to vector<1x8x1xf32>
    %23 = tpu.reciprocal %22 {approx = true} : vector<1x8x1xf32> -> vector<1x8x1xf32>
    %24 = vector.broadcast %23 : vector<1x8x1xf32> to vector<1x8x8xf32>
    %25 = arith.mulf %20, %24 : vector<1x8x8xf32>
    %26 = arith.truncf %25 : vector<1x8x8xf32> to vector<1x8x8xbf16>
    "tpu.trace_start"() <{level = 10 : i32, message = "bqk,bke->bqe"}> : () -> ()
    %cst_8 = arith.constant dense<0.000000e+00> : vector<1x8x128xf32>
    %27 = tpu.matmul %26, %12, %cst_8 {dimension_numbers = #tpu.dot_dimension_numbers<[2], [1], [1], [2], [0, 0, 0, 1, 1, 2], [0], [0]>} : vector<1x8x8xbf16>, vector<1x8x128xbf16>, vector<1x8x128xf32> -> vector<1x8x128xf32>
    "tpu.trace_stop"() : () -> ()
    %c0_9 = arith.constant 0 : index
    %c0_10 = arith.constant 0 : index
    %c0_11 = arith.constant 0 : index
    %28 = vector.load %arg3[%c0_9, %c0_10, %c0_11] : memref<1x8x128xf32, #tpu.memory_space<vmem>>, vector<1x8x128xf32>
    tpu.vector_store %arg3[%c0_9, %c0_10, %c0_11], %27 {strides = array<i32>} : memref<1x8x128xf32, #tpu.memory_space<vmem>>, vector<1x8x128xf32>,
    return
  }
  func.func @transform_0(%arg0: i32) -> (i32, i32, i32) {
    %c0_i32 = arith.constant 0 : i32
    %c0_i32_0 = arith.constant 0 : i32
    %c0_i32_1 = arith.constant 0 : i32
    return %arg0, %c0_i32, %c0_i32_0 : i32, i32, i32
  }
  func.func @transform_1(%arg0: i32) -> (i32, i32) {
    %c0_i32 = arith.constant 0 : i32
    %c0_i32_0 = arith.constant 0 : i32
    %c0_i32_1 = arith.constant 0 : i32
    return %c0_i32, %c0_i32_0 : i32, i32
  }
  func.func @transform_2(%arg0: i32) -> (i32, i32, i32) {
    %c0_i32 = arith.constant 0 : i32
    %c0_i32_0 = arith.constant 0 : i32
    %c0_i32_1 = arith.constant 0 : i32
    return %arg0, %c0_i32, %c0_i32_0 : i32, i32, i32
  }
}

</mosaic_0001>

<bundles_post_ra>
// kernel: tpu_custom_call.1
= control target key start
LH: loop header
LB: loop body
LE: loop exit
PB: predicated region body
PF: predicated region fallthrough
CT: control target
= control target key end

     0   :  { %7 = vsyncpa [#allocation3], 0  ;;  %s1017_s0 = inlined_call_operand.hbm [shape: bf16[2,8,128], index: 0, kind: input, shape index: {}]   ;;  %s1018_s1 = inlined_call_operand.hbm [shape: bf16[128,384], index: 1, kind: input, shape index: {}]   ;;  %s1019_s2 = inlined_call_operand.hbm [shape: f32[2,8,128], index: 2, kind: output, shape index: {}]  }
   0x1   :  { %9 = vsyncpa [#allocation3 + $0x1], 0 }
   0x2   :  { %10 = vsyncpa [#allocation6], 0 }
   0x3   :  { %11 = vsyncpa [#allocation4], 0 }
   0x4   :  { %13 = vsyncpa [#allocation4 + $0x1], 0  ;;  %s874_s9 = smov 0   ;;  %s876_s10 = smov 0  }
   0x5   :  { %s878_s11 = smov 0   ;;  %s880_s12 = smov 0  }
   0x6 LB: > { %s108_s15 = sshll.u32 %s1018_s1, 4  ;;  %s898_s16 = sadd.s32 4294967295, %s854_s12   ;;  %s854_s12 = sphi %s880_s12, %s1029_s12   ;;  %s850_s11 = sphi %s878_s11, %s1028_s11   ;;  %s846_s10 = sphi %s876_s10, %s1027_s10   ;;  %s842_s9 = sphi %s874_s9, %s1026_s9   ;;  %s109_s15 = int_to_ptr.hbm [resolvable:$true] %s108_s15 }
   0x7   : > { %p527_p0 = scmp.ge.s32.totalorder %s854_s12, 1  ;;  %p40_p1 = scmp.eq.s32.totalorder %s898_s16, 0 }
   0x8   : > { %p97_p2 = scmp.lt.s32.totalorder %s854_s12, 3  ;;  %s856_s18 = smov [#allocation5]  }
   0x9   : > { %s110_s19 = sshll.u32 %s856_s18, 4  ;;  %s857_s20 = smov 192   ;;  %s111_s19 = int_to_ptr.vmem [resolvable:$true] %s110_s19 }
   0xa   : > { %p903_p3 = pnand %p527_p0, %p97_p2  ;;  %s858_s21 = smov 12  }
   0xb   : > { %s526_s22 = sadd.s32 4294967294, %s854_s12   ;;  %s914_s23 = sadd.s32 1, %s854_s12  }
   0xc   : > { %p669_p4 = pneg %p903_p3  ;;  %s26_s24 = sadd.s32 1, %s850_s11 }
   0xd   : > { %s23_s25 = ssub.s32 %s854_s12, %s914_s23  ;;  %p33_p7 = scmp.ne.s32.totalorder %s850_s11, %s846_s10 }
   0xe   : > { %p670_p6 = pnand %p669_p4, %p40_p1  ;;  %p24_p8 = scmp.eq.s32.totalorder %s23_s25, 0 }
   0xf   : > { %p34_p9 = scmp.eq.s32.totalorder %s854_s12, 0  ;;  %p39_p10 = scmp.ne.s32.totalorder %s846_s10, %s842_s9 }
  0x10   : > { %672 = dma.hbm_to_vmem [thread:$0]  (!%p670_p6), %s109_s15, 3072, %s111_s19, [#allocation6], %s857_s20, %s857_s20, %s858_s21  }
  0x11   : > { %p84_p11 = scmp.eq.s32.totalorder %s898_s16, 1  ;;  %p930_p12 = por %p40_p1, %p39_p10 }
  0x12   : > { %s926_s26 = scalar_select %p24_p8, %s850_s11, %s26_s24  }
  0x13   : > { %p934_p13 = por %p84_p11, %p33_p7  ;;  %p90_p0 = scmp.eq.s32.totalorder %s526_s22, 1 }
  0x14   : > { %p35_p2 = por %p34_p9, %p33_p7  ;;  %s124_s29 = sand.u32 1, %s850_s11  }
  0x15   : > { %p939_p4 = por %p90_p0, %p39_p10  ;;  %p682_p6 = scmp.lt.s32.totalorder %s854_s12, 2 }
  0x16   : > { %s530_s3 = sshll.u32 %s124_s29, 2  ;;  %s531_s4 = sshll.u32 %s854_s12, 2 }
  0x17   : > { %s132_s7 = scalar_lea.hbm %s1017_s0, %s531_s4  ;;  %s128_s13 = scalar_lea.vmem [#allocation2], %s530_s3 }
  0x18   : > { %s134_s8 = sshll.u32 %s132_s7, 4  ;;  %s136_s14 = sshll.u32 %s128_s13, 4  ;;  %s135_s8 = int_to_ptr.hbm [resolvable:$true] %s134_s8  ;;  %s137_s14 = int_to_ptr.vmem [resolvable:$true] %s136_s14 }
  0x19   : > { %p948_p8 = pnand %p682_p6, %p35_p2  ;;  %s125_s18 = scalar_lea.sflag [#allocation3], %s124_s29 }
  0x1a   : > { %s754_s19 = sshra.s32 %s135_s8, 4  ;;  %s761_s24 = scalar_lea.hbm %s1017_s0, 8  ;;  %s755_s19 = int_to_ptr.hbm [resolvable:$true] %s754_s19 }
  0x1b   : > { %s756_s20 = scalar_lea.hbm %s755_s19, 4  ;;  %p758_p9 = pneg %p948_p8 }
  0x1c   : > { %p757_p7 = scmp.ne.s32.totalorder %s755_s19, %s756_s20  ;;  %p762_p0 = scmp.lt.s32.totalorder %s755_s19, %s1017_s0 }
  0x1d   : > { %p763_p2 = scmp.lt.s32.totalorder %s761_s24, %s756_s20 }
  0x1e   : > { %p759_p10 = pnand %p758_p9, %p757_p7 }
  0x1f   : > { %p764_p6 = por %p763_p2, %p762_p0 }
  0x20   : > { %p760_p11 = pneg %p759_p10 }
  0x22   : > { %p765_p5 = pnand %p764_p6, %p760_p11 }
  0x24   : > { %768 = shalt.err (!%p765_p5)
}
  0x25   : > { %676 = dma.hbm_to_vmem [thread:$0]  (!%p948_p8), %s135_s8, 64, %s137_s14, %s125_s18  }
  0x26   : > { %145 = sbr.rel (%p903_p3) target bundleno = 746 (0x2ea), region = 28  ;;  %s965_s29 = sand.u32 (!%p903_p3), 1, %s846_s10  }
  0x27   : > { %s533_s4 = sshll.u32 (!%p903_p3), %s965_s29, 2  ;;  %s148_s5 = scalar_lea.sflag (!%p903_p3), [#allocation3], %s965_s29 }
  0x28   : > { %s969_s6 = scalar_lea.vmem (!%p903_p3), [#allocation2], %s533_s4 }
  0x2b   : > { %829 = dma.done.wait (%p930_p12), %s148_s5, 64  }
  0x2c   : > { %831 = vsyncadd (%p930_p12), %s148_s5, 4294967232 }
  0x2d   : > { %833 = dma.done.wait (%p40_p1), [#allocation6], 3072  }
  0x2e   : > { %835 = vsyncadd (%p40_p1), [#allocation6], 4294964224  ;;  %v622_v0 = vld [vmem:[#allocation5 + $0xa8] sm:$0xf]  ;;  %v659_v1 = vld [vmem:[#allocation5 + $0xb0] sm:$0xf0] }
  0x2f   : > { %v658_v2 = vld [vmem:[#allocation5 + $0xac] sm:$0xf]  ;;  %v623_v3 = vor.u32 %v659_v1, %v622_v0  ;;  %v624_v4 = vld [vmem:[#allocation5 + $0xb4] sm:$0xf0]  ;;  %v610_v5 = vld [vmem:[#allocation5 + $0x90] sm:$0xf] }
  0x30   : > { %v656_v6 = vld [vmem:[#allocation5 + $0x98] sm:$0xf0]  ;;  %v627_v7 = vor.u32 %v658_v2, %v624_v4  ;;  %v655_v8 = vld [vmem:[#allocation5 + $0x94] sm:$0xf]  ;;  %v612_v9 = vld [vmem:[#allocation5 + $0x9c] sm:$0xf0] }
  0x31   : > { %340 = vmatpush.bf16.msra.mxu0 %v623_v3  ;;  %v611_v10 = vor.u32 %v656_v6, %v610_v5  ;;  %v615_v11 = vor.u32 %v655_v8, %v612_v9  ;;  %v598_v12 = vld [vmem:[#allocation5 + $0x78] sm:$0xf]  ;;  %v653_v13 = vld [vmem:[#allocation5 + $0x80] sm:$0xf0]  ;;  %v652_v14 = vld [vmem:[#allocation5 + $0x7c] sm:$0xf] }
  0x32   : > { %353 = vmatpush.bf16.msra.mxu1 %v627_v7  ;;  %v600_v15 = vld [vmem:[#allocation5 + $0x84] sm:$0xf0]  ;;  %v599_v16 = vor.u32 %v653_v13, %v598_v12  ;;  %v586_v18 = vld [vmem:[#allocation5 + $0x60] sm:$0xf]  ;;  %v650_v19 = vld [vmem:[#allocation5 + $0x68] sm:$0xf0] }
  0x33   : > { %v603_v17 = vor.u32 %v652_v14, %v600_v15  ;;  %v649_v20 = vld [vmem:[#allocation5 + $0x64] sm:$0xf]  ;;  %v588_v21 = vld [vmem:[#allocation5 + $0x6c] sm:$0xf0]  ;;  %v587_v22 = vor.u32 %v650_v19, %v586_v18  ;;  %v574_v24 = vld [vmem:[#allocation5 + $0x48] sm:$0xf] }
  0x34   : > { %v591_v23 = vor.u32 %v649_v20, %v588_v21  ;;  %v647_v25 = vld [vmem:[#allocation5 + $0x50] sm:$0xf0]  ;;  %v646_v26 = vld [vmem:[#allocation5 + $0x4c] sm:$0xf]  ;;  %v576_v27 = vld [vmem:[#allocation5 + $0x54] sm:$0xf0] }
  0x35   : > { %341 = vmatpush.bf16.msra.mxu0 %v611_v10  ;;  %v575_v28 = vor.u32 %v647_v25, %v574_v24  ;;  %v579_v29 = vor.u32 %v646_v26, %v576_v27  ;;  %v562_v30 = vld [vmem:[#allocation5 + $0x30] sm:$0xf]  ;;  %v644_v31 = vld [vmem:[#allocation5 + $0x38] sm:$0xf0]  ;;  %v643_v32 = vld [vmem:[#allocation5 + $0x34] sm:$0xf] }
  0x36   : > { %354 = vmatpush.bf16.msra.mxu1 %v615_v11  ;;  %v564_v33 = vld [vmem:[#allocation5 + $0x3c] sm:$0xf0]  ;;  %v563_v34 = vor.u32 %v644_v31, %v562_v30  ;;  %v550_v36 = vld [vmem:[#allocation5 + $0x18] sm:$0xf]  ;;  %v641_v37 = vld [vmem:[#allocation5 + $0x20] sm:$0xf0] }
  0x37   : > { %v567_v35 = vor.u32 %v643_v32, %v564_v33  ;;  %v640_v38 = vld [vmem:[#allocation5 + $0x1c] sm:$0xf]  ;;  %v552_v39 = vld [vmem:[#allocation5 + $0x24] sm:$0xf0]  ;;  %v551_v40 = vor.u32 %v641_v37, %v550_v36  ;;  %v538_v42 = vld [vmem:[#allocation5] sm:$0xf] }
  0x38   : > { %v555_v41 = vor.u32 %v640_v38, %v552_v39  ;;  %v638_v43 = vld [vmem:[#allocation5 + $0x8] sm:$0xf0]  ;;  %v637_v44 = vld [vmem:[#allocation5 + $0x4] sm:$0xf]  ;;  %v540_v45 = vld [vmem:[#allocation5 + $0xc] sm:$0xf0] }
  0x39   : > { %342 = vmatpush.bf16.msra.mxu0 %v599_v16  ;;  %v539_v46 = vor.u32 %v638_v43, %v538_v42  ;;  %v543_v47 = vor.u32 %v637_v44, %v540_v45  ;;  %v179_v48 = vld [vmem:[%s969_s6] sm:$0xf]  ;;  %v630_v55 = vld [vmem:[#allocation5 + $0xb0] sm:$0xf]  ;;  %v657_v59 = vld [vmem:[#allocation5 + $0xa0] sm:$0xf0] }
  0x3a   : > { %355 = vmatpush.bf16.msra.mxu1 %v603_v17  ;;  %v660_v56 = vld [vmem:[#allocation5 + $0xb8] sm:$0xf0]  ;;  %v618_v57 = vld [vmem:[#allocation5 + $0x98] sm:$0xf]  ;;  %v606_v61 = vld [vmem:[#allocation5 + $0x80] sm:$0xf] }
  0x3b   : > { %v631_v58 = vor.u32 %v660_v56, %v630_v55  ;;  %v619_v60 = vor.u32 %v657_v59, %v618_v57  ;;  %v654_v62 = vld [vmem:[#allocation5 + $0x88] sm:$0xf0]  ;;  %v594_v0 = vld [vmem:[#allocation5 + $0x68] sm:$0xf]  ;;  %v651_v1 = vld [vmem:[#allocation5 + $0x70] sm:$0xf0] }
  0x3c   : > { %v607_v63 = vor.u32 %v654_v62, %v606_v61  ;;  %v595_v2 = vor.u32 %v651_v1, %v594_v0  ;;  %v582_v3 = vld [vmem:[#allocation5 + $0x50] sm:$0xf]  ;;  %v648_v4 = vld [vmem:[#allocation5 + $0x58] sm:$0xf0]  ;;  %v570_v6 = vld [vmem:[#allocation5 + $0x38] sm:$0xf] }
  0x3d   : > { %343 = vmatpush.bf16.msra.mxu0 %v587_v22  ;;  %366 = vmatpush.bf16.msra.mxu2 %v631_v58  ;;  %v583_v5 = vor.u32 %v648_v4, %v582_v3  ;;  %v645_v7 = vld [vmem:[#allocation5 + $0x40] sm:$0xf0]  ;;  %v558_v9 = vld [vmem:[#allocation5 + $0x20] sm:$0xf]  ;;  %v642_v10 = vld [vmem:[#allocation5 + $0x28] sm:$0xf0] }
  0x3e   : > { %356 = vmatpush.bf16.msra.mxu1 %v591_v23  ;;  %v571_v8 = vor.u32 %v645_v7, %v570_v6  ;;  %v559_v11 = vor.u32 %v642_v10, %v558_v9  ;;  %vm396_vm0 = vcmask 64512   ;;  %v546_v13 = vld [vmem:[#allocation5 + $0x8] sm:$0xf]  ;;  %v639_v14 = vld [vmem:[#allocation5 + $0x10] sm:$0xf0]  ;;  %vm412_vm1 = vcmask 1043456  }
  0x3f   : > { %v547_v17 = vor.u32 %v639_v14, %v546_v13  ;;  %s634_s17 = sshll.u32 %s898_s16, 3  ;;  %s535_s27 = sshll.u32 %s965_s29, 3 }
  0x40   : > { %s441_s13 = scalar_lea.hbm %s1019_s2, %s634_s17  ;;  %s177_s14 = scalar_lea.vmem [#allocation7], %s535_s27 }
  0x41   : > { %344 = vmatpush.bf16.msra.mxu0 %v575_v28  ;;  %367 = vmatpush.bf16.msra.mxu2 %v619_v60  ;;  %s443_s15 = sshll.u32 %s177_s14, 4  ;;  %s445_s18 = sshll.u32 %s441_s13, 4  ;;  %s444_s15 = int_to_ptr.vmem [resolvable:$true] %s443_s15  ;;  %s446_s18 = int_to_ptr.hbm [resolvable:$true] %s445_s18 }
  0x42   : > { %357 = vmatpush.bf16.msra.mxu1 %v579_v29  ;;  %s431_s19 = scalar_lea.sflag [#allocation4], %s965_s29  ;;  %s798_s20 = sshra.s32 %s446_s18, 4  ;;  %s799_s20 = int_to_ptr.hbm [resolvable:$true] %s798_s20 }
  0x43   : > { %s800_s21 = scalar_lea.hbm %s799_s20, 8  ;;  %s804_s24 = scalar_lea.hbm %s1019_s2, 16 }
  0x44   : > { %p801_p1 = scmp.ne.s32.totalorder %s799_s20, %s800_s21  ;;  %p805_p12 = scmp.lt.s32.totalorder %s799_s20, %s1019_s2 }
  0x45   : > { %345 = vmatpush.bf16.msra.mxu0 %v563_v34  ;;  %368 = vmatpush.bf16.msra.mxu2 %v607_v63  ;;  %p806_p8 = scmp.lt.s32.totalorder %s804_s24, %s800_s21 }
  0x46   : > { %358 = vmatpush.bf16.msra.mxu1 %v567_v35  ;;  %p802_p3 = pnand %p801_p1, %p934_p13 }
  0x47   : > { %p807_p7 = por %p806_p8, %p805_p12 }
  0x48   : > { %p803_p5 = pneg %p802_p3 }
  0x49   : > { %346 = vmatpush.bf16.msra.mxu0 %v551_v40  ;;  %369 = vmatpush.bf16.msra.mxu2 %v595_v2 }
  0x4a   : > { %359 = vmatpush.bf16.msra.mxu1 %v555_v41  ;;  %p808_p9 = pnand %p807_p7, %p803_p5 }
  0x4d   : > { %347 = vmatpush.bf16.msra.mxu0 %v539_v46  ;;  %370 = vmatpush.bf16.msra.mxu2 %v583_v5 }
  0x4e   : > { %360 = vmatpush.bf16.msra.mxu1 %v543_v47 }
  0x50   : > { %348 = vmatmul.bf16.vlgmr.msra.gmra.mxu0 %v179_v48 }
  0x51   : > { %361 = vmatmul.bf16.vlgmr.msra.gmra.mxu1 %v179_v48  ;;  %371 = vmatpush.bf16.msra.mxu2 %v571_v8 }
  0x55   : > { %372 = vmatpush.bf16.msra.mxu2 %v559_v11 }
  0x59   : > { %373 = vmatpush.bf16.msra.mxu2 %v547_v17 }
  0x5c   : > { %374 = vmatmul.bf16.vlgmr.msra.gmra.mxu2 %v179_v48 }
  0xcd   : > { %v349_v49 = vpop.f32.mrf.mxu0 }
  0xce   : > { %v362_v50 = vpop.f32.mrf.mxu1  ;;  %v379_v52 = vpack.c.bf16 %v349_v49, %v349_v49 }
  0xcf   : > { %v380_v51 = vpack.c.bf16 %v362_v50, %v362_v50 }
  0xd1   : > { %389 = vmatpush.bf16.xpose.msra.mxu3 %v380_v51 }
  0xd5   : > { %v351_v53 = vpop.f32.mrf.mxu0 }
  0xd6   : > { %v364_v54 = vpop.f32.mrf.mxu1 }
  0xd8   : > { %390 = vmatmul.bf16.vlgmr.msra.gmra.mxu3 %v379_v52 }
  0xdf   : > { %v375_v24 = vpop.f32.mrf.mxu2 }
  0xe0   : > { %v381_v25 = vpack.c.bf16 %v375_v24, %v375_v24 }
  0xe2   : > { %v414_v26 = vsel %vm412_vm1, %v381_v25, 0 }
  0xe3   : > { %423 = vmatpush.bf16.msrb.mxu3 %v414_v26 }
  0xe7   : > { %v377_v27 = vpop.f32.mrf.mxu2 }
 0x15b   : > { %v391_v12 = vpop.f32.mrf.mxu3 }
 0x15c   : > { %v395_v15 = vmul.f32 0.17677669, %v391_v12 }
 0x15e   : > { %v397_v16 = vsel %vm396_vm0, %v395_v15, -inf }
 0x15f   : > { %398 = vmax.xlane.f32.xlu0 %v397_v16 }
 0x163   : > { %v393_v18 = vpop.f32.mrf.mxu3 }
 0x1d2   : > { %v399_v19 = vpop.xlane.xlu0 %398 }
 0x1d3   : > { %v400_v20 = vsub.f32 %v395_v15, %v399_v19 }
 0x1d5   : > { %v401_v21 = vmul.f32 1.442695, %v400_v20 }
 0x1d7   : > { %720 = vpow2.f32 %v401_v21 }
 0x1dd   : > { %v721_v22 = vpop.eup %720 }
 0x1de   : > { %v403_v23 = vsel %vm396_vm0, %v721_v22, 0.0 }
 0x1df   : > { %404 = vadd.xlane.f32.xlu0 %v403_v23 }
 0x252   : > { %v405_v28 = vpop.xlane.xlu0 %404 }
 0x253   : > { %722 = vrcp.f32 %v405_v28 }
 0x259   : > { %v723_v29 = vpop.eup %722 }
 0x25a   : > { %v407_v30 = vmul.f32 %v723_v29, %v721_v22 }
 0x25c   : > { %v408_v31 = vpack.c.bf16 %v407_v30, %v407_v30 }
 0x25e   : > { %632 = vmatmul.msk.bf16.vlgmr.msrb.gmra.mxu3 %vm396_vm0, %v408_v31 }
 0x2e1   : > { %v425_v32 = vpop.f32.mrf.mxu3 }
 0x2e2   : > { %429 = vst [vmem:[%s177_s14] sm:$0xff] %v425_v32 }
 0x2e3   : > { %811 = shalt.err (!%p808_p9)
}
 0x2e4   : > { %667 = dma.vmem_to_hbm [thread:$0]  (%p934_p13), %s444_s15, 128, %s446_s18, %s431_s19  }
 0x2e9   : > { %v427_v33 = vpop.f32.mrf.mxu3 }
 0x2ea PF: > { %s457_s29 = sand.u32 1, %s842_s9   ;;  %p1025_p10 = scmp.ge.s32.totalorder %s854_s12, 2 }
 0x2eb   : > { %s458_s4 = scalar_lea.sflag [#allocation4], %s457_s29 }
 0x2ec   : > { %p678_p11 = pnand %p1025_p10, %p939_p4 }
 0x2ee   : > { %p679_p0 = pneg %p678_p11 }
 0x2f0   : > { %837 = dma.done.wait (%p679_p0), %s458_s4, 128  }
 0x2f1   : > { %839 = vsyncadd (%p679_p0), %s458_s4, 4294967168  ;;  %p16_p2 = scmp.ge.s32.totalorder %s914_s23, 4   ;;  %s1026_s9 = smov %s846_s10 }
 0x2f2   : > { %s1027_s10 = smov %s850_s11  ;;  %s1028_s11 = smov %s926_s26 }
 0x2f3   : > { %s1029_s12 = smov %s914_s23  ;;  %18 = sbr.rel (!%p16_p2) target bundleno = 6 (0x6), region = 77 }
 0x2f8   :  { %464 = vsyncpa [#allocation3], 1 }
 0x2f9   :  { %466 = vsyncpa [#allocation3 + $0x1], 1 }
 0x2fa   :  { %467 = vsyncpa [#allocation6], 1 }
 0x2fb   :  { %468 = vsyncpa [#allocation4], 1 }
 0x2fc   :  { %470 = vsyncpa [#allocation4 + $0x1], 1 }

</bundles_post_ra>
